<compile_context>
chip_gen: v6e
topology: v6e:2x2x1
jax: 0.10.0
libtpu: 0.0.40
codegen_flags: <defaults>
</compile_context>

<pallas_src>
import jax
import jax.numpy as jnp
from jax.experimental import pallas as pl
from jax.experimental.pallas import tpu as pltpu


def _itm_head_kernel(x_ref, wt_ref, b_ref, o_ref):
    # x_ref: (TM, H)  wt_ref: (H, 2)  b_ref: (1, 2)  o_ref: (TM, 2)
    y = jnp.dot(x_ref[...], wt_ref[...], preferred_element_type=jnp.float32)
    o_ref[...] = (y + b_ref[...].astype(jnp.float32)).astype(o_ref.dtype)


def _round_up(x, m):
    return ((x + m - 1) // m) * m


@jax.jit
def itm_head(x, weight, bias):
    """Pallas implementation of ITMHead.forward (x @ W.T + b).

    x:      (..., H)  float32
    weight: (2, H)    float32  (PyTorch nn.Linear weight layout)
    bias:   (2,)      float32
    returns (..., 2)  float32
    """
    orig_shape = x.shape
    H = orig_shape[-1]
    x2 = x.reshape(-1, H)
    N = x2.shape[0]
    out_shape = orig_shape[:-1] + (2,)

    if N == 0:
        return jnp.zeros(out_shape, x.dtype)

    itemsize = jnp.dtype(x.dtype).itemsize

    # Row tile sized from a VMEM budget for the double-buffered x tile (the
    # dominant VMEM consumer). ~12 MiB across 2 buffers keeps the working set
    # comfortably inside every generation's VMEM while being large enough
    # (>=512 rows for typical H) to sit on the HBM roofline plateau.
    x_budget_bytes = 12 * 1024 * 1024
    tile_m = (x_budget_bytes // (2 * H * itemsize)) // 8 * 8
    tile_m = max(8, min(tile_m, 2048, _round_up(N, 8)))
    if N < tile_m:
        # Single block covering all rows exactly (block dim == full array dim
        # is always a legal TPU block shape, even if not a multiple of 8).
        tile_m = N

    # Hoist the weight transpose out of the kernel: one-time (2,H) -> (H,2).
    w_t = weight.T
    bias2 = bias.reshape(1, 2)

    # Double-buffered x/out tiles + weight + bias, with 2x margin for pipeline
    # internals; capped well below v7x's 64 MiB physical VMEM.
    vmem_bytes = 2 * tile_m * (H + 2) * itemsize + 4 * (H + 1) * 2 * itemsize
    vmem_limit = int(min(max(2 * vmem_bytes, 4 * 1024 * 1024), 48 * 1024 * 1024))

    out = pl.pallas_call(
        _itm_head_kernel,
        out_shape=jax.ShapeDtypeStruct((N, 2), x.dtype),
        grid_spec=pltpu.PrefetchScalarGridSpec(
            num_scalar_prefetch=0,
            grid=(pl.cdiv(N, tile_m),),
            in_specs=[
                pl.BlockSpec((tile_m, H), lambda i: (i, 0)),   # x row tile
                pl.BlockSpec((H, 2), lambda i: (0, 0)),        # pre-transposed W
                pl.BlockSpec((1, 2), lambda i: (0, 0)),        # bias
            ],
            out_specs=pl.BlockSpec((tile_m, 2), lambda i: (i, 0)),
        ),
        compiler_params=pltpu.CompilerParams(
            dimension_semantics=("parallel",),  # shards rows across v7x's 2 TCs
            vmem_limit_bytes=vmem_limit,
        ),
    )(x2, w_t, bias2)

    # TODO(synk): optionally stream x/weight as bf16 (f32 accumulate) to halve
    # HBM traffic when the surrounding model tolerates the cast.
    return out.reshape(out_shape)


if __name__ == "__main__":
    hidden_size = 32
    batch = 2

    key = jax.random.PRNGKey(0)
    kx, kw, kb, kx3 = jax.random.split(key, 4)

    # Deterministic synthetic parameters (shapes match nn.Linear(hidden, 2)).
    bound = 1.0 / (hidden_size ** 0.5)
    weight = jax.random.uniform(kw, (2, hidden_size), jnp.float32, -bound, bound)
    bias = jax.random.uniform(kb, (2,), jnp.float32, -bound, bound)

    # Input 1: CLS-style features (batch, hidden).
    x = jax.random.normal(kx, (batch, hidden_size), jnp.float32)
    out = jax.block_until_ready(itm_head(x, weight, bias))
    ref = x @ weight.T + bias
    assert out.shape == (batch, 2)
    assert jnp.allclose(out, ref, atol=1e-5, rtol=1e-5)

    # Input 2: exercise the leading-dim flatten/reshape path (batch, seq, hidden).
    x3 = jax.random.normal(kx3, (batch, 8, hidden_size), jnp.float32)
    out3 = jax.block_until_ready(itm_head(x3, weight, bias))
    ref3 = x3 @ weight.T + bias
    assert out3.shape == (batch, 8, 2)
    assert jnp.allclose(out3, ref3, atol=1e-5, rtol=1e-5)

    print("KERNEL_OK")
</pallas_src>

<mosaic_0001>
module attributes {stable_mosaic.version = 11 : i64} {
  func.func @_itm_head_kernel(%arg0: i32, %arg1: memref<2x32xf32, #tpu.memory_space<vmem>>, %arg2: memref<32x2xf32, #tpu.memory_space<vmem>>, %arg3: memref<1x2xf32, #tpu.memory_space<vmem>>, %arg4: memref<2x2xf32, #tpu.memory_space<vmem>>) attributes {dimension_semantics = [#tpu.dimension_semantics<parallel>], iteration_bounds = array<i64: 1>, scalar_prefetch = 0 : i64, scratch_operands = 0 : i64, tpu.core_type = #tpu.core_type<tc>, window_params = [{transform_indices = @transform_0, window_bounds = array<i64: 2, 32>}, {pipeline_mode = #tpu.pipeline_mode<synchronous>, transform_indices = @transform_1, window_bounds = array<i64: 32, 2>}, {pipeline_mode = #tpu.pipeline_mode<synchronous>, transform_indices = @transform_2, window_bounds = array<i64: 1, 2>}, {transform_indices = @transform_3, window_bounds = array<i64: 2, 2>}]} {
    %c0 = arith.constant 0 : index
    %c0_0 = arith.constant 0 : index
    %0 = vector.load %arg1[%c0, %c0_0] : memref<2x32xf32, #tpu.memory_space<vmem>>, vector<2x32xf32>
    %c0_1 = arith.constant 0 : index
    %c0_2 = arith.constant 0 : index
    %1 = vector.load %arg2[%c0_1, %c0_2] : memref<32x2xf32, #tpu.memory_space<vmem>>, vector<32x2xf32>
    %cst = arith.constant dense<0.000000e+00> : vector<2x2xf32>
    %2 = tpu.matmul %0, %1, %cst {dimension_numbers = #tpu.dot_dimension_numbers<[1], [0], [0], [1], [0, 0, 1, 1], [], []>} : vector<2x32xf32>, vector<32x2xf32>, vector<2x2xf32> -> vector<2x2xf32>
    %c0_3 = arith.constant 0 : index
    %c0_4 = arith.constant 0 : index
    %3 = vector.load %arg3[%c0_3, %c0_4] : memref<1x2xf32, #tpu.memory_space<vmem>>, vector<1x2xf32>
    %4 = vector.broadcast %3 : vector<1x2xf32> to vector<2x2xf32>
    %5 = arith.addf %2, %4 : vector<2x2xf32>
    %c0_5 = arith.constant 0 : index
    %c0_6 = arith.constant 0 : index
    %6 = vector.load %arg4[%c0_5, %c0_6] : memref<2x2xf32, #tpu.memory_space<vmem>>, vector<2x2xf32>
    tpu.vector_store %arg4[%c0_5, %c0_6], %5 {strides = array<i32>} : memref<2x2xf32, #tpu.memory_space<vmem>>, vector<2x2xf32>,
    return
  }
  func.func @transform_0(%arg0: i32) -> (i32, i32) {
    %c0_i32 = arith.constant 0 : i32
    %c0_i32_0 = arith.constant 0 : i32
    return %arg0, %c0_i32 : i32, i32
  }
  func.func @transform_1(%arg0: i32) -> (i32, i32) {
    %c0_i32 = arith.constant 0 : i32
    %c0_i32_0 = arith.constant 0 : i32
    %c0_i32_1 = arith.constant 0 : i32
    return %c0_i32, %c0_i32_0 : i32, i32
  }
  func.func @transform_2(%arg0: i32) -> (i32, i32) {
    %c0_i32 = arith.constant 0 : i32
    %c0_i32_0 = arith.constant 0 : i32
    %c0_i32_1 = arith.constant 0 : i32
    return %c0_i32, %c0_i32_0 : i32, i32
  }
  func.func @transform_3(%arg0: i32) -> (i32, i32) {
    %c0_i32 = arith.constant 0 : i32
    %c0_i32_0 = arith.constant 0 : i32
    return %arg0, %c0_i32 : i32, i32
  }
}

</mosaic_0001>

<bundles_post_ra>
// kernel: itm_head.1
= control target key start
LH: loop header
LB: loop body
LE: loop exit
PB: predicated region body
PF: predicated region fallthrough
CT: control target
= control target key end

     0   :  { %v160_v1 = vmov 0.0   ;;  %vm161_vm0 = vmmov 0   ;;  %s204_s0 = inlined_call_operand.vmem [shape: f32[2,32], index: 0, kind: input, shape index: {}]   ;;  %s205_s1 = inlined_call_operand.vmem [shape: f32[32,2], index: 1, kind: input, shape index: {}]   ;;  %s206_s2 = inlined_call_operand.vmem [shape: f32[1,2], index: 2, kind: input, shape index: {}]   ;;  %s207_s3 = inlined_call_operand.hbm [shape: f32[2,2], index: 3, kind: output, shape index: {}]  }
   0x1   :  { %v19_v0 = vld [vmem:[%s205_s1 + $0x18] sm:$0xff]  ;;  %124 = vmatprep.subr.mxu0 %v160_v1  ;;  %v18_v2 = vld [vmem:[%s205_s1 + $0x10] sm:$0xff]  ;;  %132 = vmatprep.mubr.msk.f32.mxu0 %vm161_vm0, %v160_v1 }
   0x2   :  { %125 = vmatpush3.msra.mxu0 %v19_v0 }
   0x3   :  { %8 = vsyncpa [#allocation3], 0  ;;  %126 = vmatprep.subr.mxu0 %v160_v1  ;;  %v17_v3 = vld [vmem:[%s205_s1 + $0x8] sm:$0xff]  ;;  %v16_v4 = vld [vmem:[%s205_s1] sm:$0xff]  ;;  %vm27_vm1 = vcmask 261120   ;;  %s162_s24 = smov [#allocation2]  }
   0x4   :  { %127 = vmatpush3.msra.mxu0 %v18_v2  ;;  %v15_v5 = vld [vmem:[%s204_s0] sm:$0x3]  ;;  %s109_s25 = sshll.u32 %s162_s24, 4  ;;  %vm101_vm2 = vcmask 9216   ;;  %s110_s25 = int_to_ptr.vmem [resolvable:$true] %s109_s25 }
   0x5   :  { %128 = vmatprep.subr.mxu0 %v160_v1  ;;  %v117_v6 = vld [vmem:[%s206_s2] ss:$0 sm:$0xff]  ;;  %s138_s1 = scalar_lea.vmem %s110_s25, 32  ;;  %p143_p1 = scmp.lt.s32.totalorder %s110_s25, %s110_s25 }
   0x6   :  { %129 = vmatpush3.msra.mxu0 %v17_v3  ;;  %p139_p0 = scmp.ne.s32.totalorder %s110_s25, %s138_s1  ;;  %p144_p2 = scmp.lt.s32.totalorder %s138_s1, %s138_s1 }
   0x7   :  { %130 = vmatprep.subr.mxu0 %v160_v1 }
   0x8   :  { %131 = vmatpush3.msra.mxu0 %v16_v4  ;;  %p145_p3 = por %p144_p2, %p143_p1 }
   0x9   :  { %133 = vmatmul.mubr.msk.f32.vlgmr.msra.gmra.mxu0 %vm27_vm1, %v15_v5 }
   0xa   :  { %p146_p4 = pnand %p145_p3, %p139_p0 }
  0xc9   :  { %v97_v7 = vpop.f32.mrf.mxu0 }
  0xca   :  { %v98_v8 = vadd.f32 %v117_v6, %v97_v7 }
  0xcb   :  { %v134_v9 = vpop.f32.mrf.mxu0 }
  0xcc   :  { %102 = vst.msk [vmem:[#allocation2] sm:$0x3] %vm101_vm2, %v98_v8 }
  0xcd   :  { %149 = shalt.err (!%p146_p4)
}
  0xce   :  { %112 = dma.vmem_to_hbm [thread:$0]  %s110_s25, 32, %s207_s3, [#allocation3]  }
  0xcf   :  { %158 = dma.done.wait [#allocation3], 32  }
  0xd0   :  { %159 = vsyncadd [#allocation3], 4294967264 }
  0xd1   :  { %116 = vsyncpa [#allocation3], 1 }

</bundles_post_ra>
